<compile_context>
chip_gen: v7x
topology: tpu7x:2x2x1
jax: 0.10.0
libtpu: 0.0.40
codegen_flags: <defaults>
</compile_context>

<pallas_src>
import functools

import jax
import jax.numpy as jnp
from jax.experimental import pallas as pl
from jax.experimental.pallas import tpu as pltpu

_LANES_WIDE = 512   # preferred lane-dense slab width (multiple of 128)
_LANES_MIN = 128    # hardware lane count
_SUBLANES = 8       # f32 sublane count
_ROW_TILE = 1024    # rows per grid step (512-2048 sweet spot; ~2 MiB/tile f32)


def _copy_kernel(x_ref, o_ref):
    # TODO(synk): `Decoder.forward` is abstract (raises NotImplementedError);
    # this identity body is the scaffold a concrete subclass replaces with
    # real decoder compute (tiled attention / RNN step, f32 VMEM accumulators
    # with pl.when init/finalize, 128/256-aligned MXU tiles, masked padding).
    o_ref[...] = x_ref[...]


@jax.jit
def _pallas_passthrough(x):
    """Lane-dense, row-tiled Pallas identity over `x` (scaffold path only)."""
    orig_shape = x.shape
    flat = x.reshape(-1)
    n = flat.shape[0]

    # Pick lane width / padding (all static at trace time).
    if n % _LANES_WIDE == 0:
        lanes, padded_n = _LANES_WIDE, n
    elif n % _LANES_MIN == 0:
        lanes, padded_n = _LANES_MIN, n
    else:
        # Pad only when needed, and to an 8*128-aligned boundary so the row
        # count stays (8,128)-tiling friendly for tiled blocks.
        lanes = _LANES_MIN
        chunk = _SUBLANES * _LANES_MIN
        padded_n = pl.cdiv(n, chunk) * chunk
        flat = jnp.pad(flat, (0, padded_n - n))

    rows = padded_n // lanes
    x2d = flat.reshape(rows, lanes)

    # Row-tiled grid; whole-array block only when the slab is already small.
    tr = _ROW_TILE if rows > _ROW_TILE else rows
    grid = (pl.cdiv(rows, tr),)
    nbytes = x2d.size * x2d.dtype.itemsize

    out2d = pl.pallas_call(
        _copy_kernel,
        out_shape=jax.ShapeDtypeStruct(x2d.shape, x2d.dtype),
        grid=grid,
        in_specs=[pl.BlockSpec((tr, lanes), lambda i: (i, 0))],
        out_specs=pl.BlockSpec((tr, lanes), lambda i: (i, 0)),
        compiler_params=pltpu.CompilerParams(
            # Row axis is independent work -> shard across TCs on v7x;
            # harmless no-op on single-TC v5e/v6e.
            dimension_semantics=("parallel",),
            # Tiles are ~2 MiB; 32 MiB scoped limit fits every chip
            # (v7x has 64 MiB physical VMEM, v5e/v6e have 128 MiB).
            vmem_limit_bytes=32 << 20,
        ),
        cost_estimate=pl.CostEstimate(
            flops=0, transcendentals=0, bytes_accessed=2 * nbytes
        ),
    )(x2d)

    out = out2d.reshape(-1)
    if padded_n != n:
        out = out[:n]
    return out.reshape(orig_shape)


class Decoder:
    """JAX/Pallas mirror of the abstract PyTorch Decoder base class."""

    def __init__(self):
        # PyTorch __init__ defines no parameters; nothing to initialize.
        pass

    def init_states(self, X, *args):
        # Matches the abstract PyTorch contract.
        raise NotImplementedError

    def forward(self, X, *args):
        # The PyTorch base class raises NotImplementedError here.
        raise NotImplementedError

    def _forward_kernel(self, X, *args, use_pallas_scaffold=False):
        # Fast path (default): the base class defines zero compute, so the
        # identity needs no kernel launch and no HBM read/write at all.
        if not use_pallas_scaffold:
            return X
        # Scaffold path (debug / subclass template): run the Pallas kernel.
        return _pallas_passthrough(X)


if __name__ == "__main__":
    key = jax.random.PRNGKey(0)
    # Small shapes consistent with an encoder-decoder seq2seq setting:
    # batch=2, seq=8, hidden=32.
    B, S, H = 2, 8, 32
    X = jax.random.normal(key, (B, S, H), dtype=jnp.float32)

    dec = Decoder()

    # Verify the abstract contract is preserved (forward semantics of the
    # original module: both methods raise NotImplementedError).
    try:
        dec.forward(X)
        raise AssertionError("forward() should raise NotImplementedError")
    except NotImplementedError:
        pass
    try:
        dec.init_states(X)
        raise AssertionError("init_states() should raise NotImplementedError")
    except NotImplementedError:
        pass

    # Fast path: identity short-circuit, no kernel launch, no extra HBM traffic.
    fast = dec._forward_kernel(X)
    assert fast is X

    # Scaffold path: run the Pallas kernel once to validate the template a
    # concrete subclass would fill in with real decoder compute.
    out = dec._forward_kernel(X, use_pallas_scaffold=True)
    out = jax.block_until_ready(out)

    assert out.shape == X.shape and out.dtype == X.dtype
    assert bool(jnp.allclose(out, X))
    print("KERNEL_OK")
</pallas_src>

<mosaic_0001>
module attributes {stable_mosaic.version = 11 : i64} {
  func.func @_copy_kernel(%arg0: i32, %arg1: memref<1x512xf32, #tpu.memory_space<vmem>>, %arg2: memref<1x512xf32, #tpu.memory_space<vmem>>) attributes {dimension_semantics = [#tpu.dimension_semantics<parallel>], iteration_bounds = array<i64: 1>, scalar_prefetch = 0 : i64, scratch_operands = 0 : i64, tpu.core_type = #tpu.core_type<tc>, window_params = [{transform_indices = @transform_0, window_bounds = array<i64: 1, 512>}, {transform_indices = @transform_1, window_bounds = array<i64: 1, 512>}]} {
    %c0 = arith.constant 0 : index
    %c0_0 = arith.constant 0 : index
    %0 = vector.load %arg1[%c0, %c0_0] : memref<1x512xf32, #tpu.memory_space<vmem>>, vector<1x512xf32>
    %c0_1 = arith.constant 0 : index
    %c0_2 = arith.constant 0 : index
    %1 = vector.load %arg2[%c0_1, %c0_2] : memref<1x512xf32, #tpu.memory_space<vmem>>, vector<1x512xf32>
    tpu.vector_store %arg2[%c0_1, %c0_2], %0 {strides = array<i32>} : memref<1x512xf32, #tpu.memory_space<vmem>>, vector<1x512xf32>,
    return
  }
  func.func @transform_0(%arg0: i32) -> (i32, i32) {
    %c0_i32 = arith.constant 0 : i32
    %c0_i32_0 = arith.constant 0 : i32
    return %arg0, %c0_i32 : i32, i32
  }
  func.func @transform_1(%arg0: i32) -> (i32, i32) {
    %c0_i32 = arith.constant 0 : i32
    %c0_i32_0 = arith.constant 0 : i32
    return %arg0, %c0_i32 : i32, i32
  }
}

</mosaic_0001>

<bundles_post_ra>
// kernel: _pallas_passthrough.1
= control target key start
LH: loop header
LB: loop body
LE: loop exit
PB: predicated region body
PF: predicated region fallthrough
CT: control target
= control target key end

     0   :  { %v9_v0 = vlaneseq  ;;  %s34_s0 = inlined_call_operand.vmem [shape: f32[1,512], index: 0, kind: input, shape index: {}]   ;;  %s35_s1 = inlined_call_operand.vmem [shape: f32[1,512], index: 1, kind: output, shape index: {}]  }
   0x1   :  { %v8_v1 = vld [vmem:[%s34_s0] sm:$0xf] }
   0x2   :  { %vm11_vm0 = vcmp.lt.s32.totalorder %v9_v0, 512 }
   0x3   :  { %13 = vst.msk [vmem:[%s35_s1] sm:$0xf] %vm11_vm0, %v8_v1 }

</bundles_post_ra>
